<compile_context>
chip_gen: v7x
topology: tpu7x:2x2x1
jax: 0.10.0
libtpu: 0.0.40
codegen_flags: <defaults>
</compile_context>

<pallas_src>
import math

import jax
import jax.numpy as jnp
from jax import lax
from jax.experimental import pallas as pl
from jax.experimental.pallas import tpu as pltpu


# ----------------------------------------------------------------------------
# Fused kernel: embedding + positional enc + all TransformerLayers + output head
# ----------------------------------------------------------------------------
def _fused_transformer_kernel(
    idx_ref,        # [T, 1]   int32 token indices        (same block every step)
    emb_ref,        # [V, D]   embedding table            (same block every step)
    pos_ref,        # [T, D]   positional embeddings      (same block every step)
    wqkv_ref,       # [D, 3*Di]  per-layer packed QKV weights (scale folded into Wq)
    bqkv_ref,       # [1, 3*Di]  per-layer packed QKV biases  (scale folded into bq)
    wp_ref,         # [Di, D]
    bp_ref,         # [1, D]
    w1_ref,         # [D, Di]
    b1_ref,         # [1, Di]
    w2_ref,         # [Di, D]
    b2_ref,         # [1, D]
    wout_ref,       # [D, C]
    bout_ref,       # [1, C]
    attn_ref,       # out: [T, T]  (layer-sliced -> full output [L, T, T])
    logp_ref,       # out: [T, C]  (written on the last grid step only)
    x_scratch,      # VMEM [T, D] f32 -- activation, persists across grid steps
):
    l = pl.program_id(0)
    T = pos_ref.shape[0]
    V = emb_ref.shape[0]
    Di = wp_ref.shape[0]

    # ---- step 0: embedding lookup (one-hot matmul) + positional encoding ----
    @pl.when(l == 0)
    def _():
        idx = idx_ref[...]                                           # [T, 1] int32
        onehot = (lax.broadcasted_iota(jnp.int32, (T, V), 1) == idx).astype(jnp.float32)
        x_scratch[...] = (
            jnp.dot(onehot, emb_ref[...], preferred_element_type=jnp.float32)
            + pos_ref[...]
        )

    x = x_scratch[...]                                               # [T, D]

    # ---- fused QKV projection (1/sqrt(Di) already folded into Wq / bq) ----
    qkv = jnp.dot(x, wqkv_ref[...], preferred_element_type=jnp.float32) + bqkv_ref[...]
    q = qkv[:, :Di]
    k = qkv[:, Di:2 * Di]
    v = qkv[:, 2 * Di:]

    # scores = q @ k^T via dot_general (contract feature axes, no transpose of k)
    scores = lax.dot_general(q, k, (((1,), (1,)), ((), ())),
                             preferred_element_type=jnp.float32)     # [T, T]
    m = jnp.max(scores, axis=-1, keepdims=True)
    e = jnp.exp(scores - m)
    probs = e * pl.reciprocal(jnp.sum(e, axis=-1, keepdims=True), approx=True)
    attn_ref[...] = probs

    attn_out = jnp.dot(probs, v, preferred_element_type=jnp.float32)             # [T, Di]
    proj = jnp.dot(attn_out, wp_ref[...], preferred_element_type=jnp.float32) + bp_ref[...]
    h = proj + x                                                                 # residual

    # FFN: Linear -> ReLU -> Linear (reference has NO residual around the FFN)
    ff = jnp.maximum(
        jnp.dot(h, w1_ref[...], preferred_element_type=jnp.float32) + b1_ref[...], 0.0)
    new_x = jnp.dot(ff, w2_ref[...], preferred_element_type=jnp.float32) + b2_ref[...]
    x_scratch[...] = new_x

    # ---- last step: output Linear + LogSoftmax (exact, max-subtracted) ----
    @pl.when(l == pl.num_programs(0) - 1)
    def _():
        logits = (jnp.dot(new_x, wout_ref[...], preferred_element_type=jnp.float32)
                  + bout_ref[...])
        mm = jnp.max(logits, axis=-1, keepdims=True)
        lse = mm + jnp.log(jnp.sum(jnp.exp(logits - mm), axis=-1, keepdims=True))
        logp_ref[...] = logits - lse


# ----------------------------------------------------------------------------
# Python wrappers
# ----------------------------------------------------------------------------
def pack_params(params):
    """Stack per-layer weights on a leading layer axis, pack QKV into one slab,
    and fold the 1/sqrt(Di) attention scale into Wq / bq (done once, not per call)."""
    layers = params["layers"]
    Di = layers[0]["wq"].shape[1]
    scale = 1.0 / math.sqrt(Di)
    return {
        "embedding": params["embedding"],
        "pos_embedding": params["pos_embedding"],
        "w_out": params["w_out"],
        "b_out": params["b_out"],
        "wqkv": jnp.stack([jnp.concatenate(
            [lp["wq"] * scale, lp["wk"], lp["wv"]], axis=1) for lp in layers]),
        "bqkv": jnp.stack([jnp.concatenate(
            [lp["bq"] * scale, lp["bk"], lp["bv"]], axis=1) for lp in layers]),
        "wp": jnp.stack([lp["wp"] for lp in layers]),
        "bp": jnp.stack([lp["bp"] for lp in layers]),
        "w1": jnp.stack([lp["w1"] for lp in layers]),
        "b1": jnp.stack([lp["b1"] for lp in layers]),
        "w2": jnp.stack([lp["w2"] for lp in layers]),
        "b2": jnp.stack([lp["b2"] for lp in layers]),
    }


@jax.jit
def _fused_forward(indices, packed):
    T = indices.shape[0]
    V, D = packed["embedding"].shape
    L, _, three_di = packed["wqkv"].shape
    Di = three_di // 3
    C = packed["w_out"].shape[1]

    idx2d = indices.astype(jnp.int32).reshape(T, 1)
    pos = packed["pos_embedding"][:T]

    const2d = lambda l: (0, 0)        # block constant across layers
    per_layer = lambda l: (l, 0, 0)   # stream layer l's slice

    grid_spec = pltpu.PrefetchScalarGridSpec(
        num_scalar_prefetch=0,
        grid=(L,),
        in_specs=[
            pl.BlockSpec((T, 1), const2d),                 # token indices
            pl.BlockSpec((V, D), const2d),                 # embedding table
            pl.BlockSpec((T, D), const2d),                 # positional embeddings
            pl.BlockSpec((None, D, 3 * Di), per_layer),    # wqkv  [L, D, 3Di]
            pl.BlockSpec((None, 1, 3 * Di), per_layer),    # bqkv  [L, 1, 3Di]
            pl.BlockSpec((None, Di, D), per_layer),        # wp
            pl.BlockSpec((None, 1, D), per_layer),         # bp
            pl.BlockSpec((None, D, Di), per_layer),        # w1
            pl.BlockSpec((None, 1, Di), per_layer),        # b1
            pl.BlockSpec((None, Di, D), per_layer),        # w2
            pl.BlockSpec((None, 1, D), per_layer),         # b2
            pl.BlockSpec((D, C), const2d),                 # w_out
            pl.BlockSpec((1, C), const2d),                 # b_out
        ],
        out_specs=(
            pl.BlockSpec((None, T, T), per_layer),         # attention maps [L, T, T]
            pl.BlockSpec((T, C), const2d),                 # log-probs      [T, C]
        ),
        scratch_shapes=[pltpu.VMEM((T, D), jnp.float32)],  # activation carry
    )

    attn, log_probs = pl.pallas_call(
        _fused_transformer_kernel,
        grid_spec=grid_spec,
        out_shape=(
            jax.ShapeDtypeStruct((L, T, T), jnp.float32),
            jax.ShapeDtypeStruct((T, C), jnp.float32),
        ),
        compiler_params=pltpu.CompilerParams(
            # layer axis carries a sequential dependency through x_scratch
            dimension_semantics=("arbitrary",),
        ),
    )(
        idx2d, packed["embedding"], pos,
        packed["wqkv"], packed["bqkv"],
        packed["wp"], packed["bp"],
        packed["w1"], packed["b1"],
        packed["w2"], packed["b2"],
        packed["w_out"], packed["b_out"],
    )
    return log_probs, attn


def transformer_forward(indices, packed):
    """Full Transformer.forward (unbatched). indices: [T] int32."""
    log_probs, attn = _fused_forward(indices, packed)
    return log_probs, [attn[l] for l in range(attn.shape[0])]


# ----------------------------------------------------------------------------
# Deterministic parameter init (mirrors the PyTorch module's parameter set)
# ----------------------------------------------------------------------------
def init_params(key, vocab_size, num_positions, d_model, d_internal, num_classes, num_layers):
    def nrm(k, shape, scale=0.1):
        return (scale * jax.random.normal(k, shape)).astype(jnp.float32)

    keys = jax.random.split(key, 4 + num_layers)
    params = {
        "embedding": nrm(keys[0], (vocab_size, d_model)),
        "pos_embedding": nrm(keys[1], (num_positions, d_model)),
        "w_out": nrm(keys[2], (d_model, num_classes)),
        "b_out": nrm(keys[3], (1, num_classes)),
        "layers": [],
    }
    for li in range(num_layers):
        lk = jax.random.split(keys[4 + li], 12)
        params["layers"].append({
            "wq": nrm(lk[0], (d_model, d_internal)),
            "bq": nrm(lk[1], (1, d_internal)),
            "wk": nrm(lk[2], (d_model, d_internal)),
            "bk": nrm(lk[3], (1, d_internal)),
            "wv": nrm(lk[4], (d_model, d_internal)),
            "bv": nrm(lk[5], (1, d_internal)),
            "wp": nrm(lk[6], (d_internal, d_model)),
            "bp": nrm(lk[7], (1, d_model)),
            "w1": nrm(lk[8], (d_model, d_internal)),
            "b1": nrm(lk[9], (1, d_internal)),
            "w2": nrm(lk[10], (d_internal, d_model)),
            "b2": nrm(lk[11], (1, d_model)),
        })
    return params


def reference_forward(indices, params):
    """Pure-JAX reference matching the PyTorch module's forward."""
    x = params["embedding"][indices] + params["pos_embedding"][:indices.shape[0]]
    attn_maps = []
    for lp in params["layers"]:
        q = x @ lp["wq"] + lp["bq"]
        k = x @ lp["wk"] + lp["bk"]
        v = x @ lp["wv"] + lp["bv"]
        s = (q @ k.T) / math.sqrt(q.shape[-1])
        p = jax.nn.softmax(s, axis=-1)
        attn_maps.append(p)
        h = (p @ v) @ lp["wp"] + lp["bp"] + x
        f = jnp.maximum(h @ lp["w1"] + lp["b1"], 0.0)
        x = f @ lp["w2"] + lp["b2"]
    logits = x @ params["w_out"] + params["b_out"]
    return jax.nn.log_softmax(logits, axis=-1), attn_maps


if __name__ == "__main__":
    vocab_size = 16
    num_positions = 20
    d_model = 32
    d_internal = 16
    num_classes = 4
    num_layers = 2
    seq_len = 8

    root = jax.random.PRNGKey(0)
    k_params, k_idx = jax.random.split(root)
    params = init_params(k_params, vocab_size, num_positions, d_model,
                         d_internal, num_classes, num_layers)
    indices = jax.random.randint(k_idx, (seq_len,), 0, vocab_size, dtype=jnp.int32)

    packed = pack_params(params)
    log_probs, attention_maps = transformer_forward(indices, packed)
    jax.block_until_ready(log_probs)
    for a in attention_maps:
        jax.block_until_ready(a)

    # shape / sanity checks
    assert log_probs.shape == (seq_len, num_classes)
    assert len(attention_maps) == num_layers
    assert all(a.shape == (seq_len, seq_len) for a in attention_maps)
    assert bool(jnp.allclose(jnp.sum(jnp.exp(log_probs), axis=-1), 1.0, atol=1e-4))

    # numerical check against a pure-JAX reference (loose tol: approx reciprocal in softmax)
    ref_lp, ref_attn = reference_forward(indices, params)
    assert bool(jnp.allclose(log_probs, ref_lp, atol=1e-2, rtol=1e-2))
    assert all(bool(jnp.allclose(a, r, atol=1e-2, rtol=1e-2))
               for a, r in zip(attention_maps, ref_attn))

    print("KERNEL_OK")
</pallas_src>

<mosaic_0001>
module attributes {stable_mosaic.version = 11 : i64} {
  func.func @_fused_transformer_kernel(%arg0: i32, %arg1: memref<8x1xi32, #tpu.memory_space<vmem>>, %arg2: memref<16x32xf32, #tpu.memory_space<vmem>>, %arg3: memref<8x32xf32, #tpu.memory_space<vmem>>, %arg4: memref<1x32x48xf32, #tpu.memory_space<vmem>>, %arg5: memref<1x1x48xf32, #tpu.memory_space<vmem>>, %arg6: memref<1x16x32xf32, #tpu.memory_space<vmem>>, %arg7: memref<1x1x32xf32, #tpu.memory_space<vmem>>, %arg8: memref<1x32x16xf32, #tpu.memory_space<vmem>>, %arg9: memref<1x1x16xf32, #tpu.memory_space<vmem>>, %arg10: memref<1x16x32xf32, #tpu.memory_space<vmem>>, %arg11: memref<1x1x32xf32, #tpu.memory_space<vmem>>, %arg12: memref<32x4xf32, #tpu.memory_space<vmem>>, %arg13: memref<1x4xf32, #tpu.memory_space<vmem>>, %arg14: memref<1x8x8xf32, #tpu.memory_space<vmem>>, %arg15: memref<8x4xf32, #tpu.memory_space<vmem>>, %arg16: memref<8x32xf32, #tpu.memory_space<vmem>>) attributes {dimension_semantics = [#tpu.dimension_semantics<arbitrary>], iteration_bounds = array<i64: 2>, scalar_prefetch = 0 : i64, scratch_operands = 1 : i64, tpu.core_type = #tpu.core_type<tc>, window_params = [{pipeline_mode = #tpu.pipeline_mode<synchronous>, transform_indices = @transform_0, window_bounds = array<i64: 8, 1>}, {pipeline_mode = #tpu.pipeline_mode<synchronous>, transform_indices = @transform_1, window_bounds = array<i64: 16, 32>}, {pipeline_mode = #tpu.pipeline_mode<synchronous>, transform_indices = @transform_2, window_bounds = array<i64: 8, 32>}, {transform_indices = @transform_3, window_bounds = array<i64: 1, 32, 48>}, {transform_indices = @transform_4, window_bounds = array<i64: 1, 1, 48>}, {transform_indices = @transform_5, window_bounds = array<i64: 1, 16, 32>}, {transform_indices = @transform_6, window_bounds = array<i64: 1, 1, 32>}, {transform_indices = @transform_7, window_bounds = array<i64: 1, 32, 16>}, {transform_indices = @transform_8, window_bounds = array<i64: 1, 1, 16>}, {transform_indices = @transform_9, window_bounds = array<i64: 1, 16, 32>}, {transform_indices = @transform_10, window_bounds = array<i64: 1, 1, 32>}, {pipeline_mode = #tpu.pipeline_mode<synchronous>, transform_indices = @transform_11, window_bounds = array<i64: 32, 4>}, {pipeline_mode = #tpu.pipeline_mode<synchronous>, transform_indices = @transform_12, window_bounds = array<i64: 1, 4>}, {transform_indices = @transform_13, window_bounds = array<i64: 1, 8, 8>}, {pipeline_mode = #tpu.pipeline_mode<synchronous>, transform_indices = @transform_14, window_bounds = array<i64: 8, 4>}]} {
    %c0_i32 = arith.constant 0 : i32
    %0 = arith.cmpi eq, %arg0, %c0_i32 : i32
    %1 = arith.extui %0 : i1 to i32
    %c0_i32_0 = arith.constant 0 : i32
    %2 = arith.cmpi ne, %1, %c0_i32_0 : i32
    scf.if %2 {
      %c0_40 = arith.constant 0 : index
      %c0_41 = arith.constant 0 : index
      %57 = vector.load %arg1[%c0_40, %c0_41] : memref<8x1xi32, #tpu.memory_space<vmem>>, vector<8x1xi32>
      %58 = tpu.iota {dimensions = array<i32: 1>} : vector<8x16xi32>
      %59 = vector.broadcast %57 : vector<8x1xi32> to vector<8x16xi32>
      %60 = arith.cmpi eq, %58, %59 : vector<8x16xi32>
      %61 = arith.extui %60 : vector<8x16xi1> to vector<8x16xi32>
      %62 = arith.sitofp %61 : vector<8x16xi32> to vector<8x16xf32>
      %c0_42 = arith.constant 0 : index
      %c0_43 = arith.constant 0 : index
      %63 = vector.load %arg2[%c0_42, %c0_43] : memref<16x32xf32, #tpu.memory_space<vmem>>, vector<16x32xf32>
      %cst_44 = arith.constant dense<0.000000e+00> : vector<8x32xf32>
      %64 = tpu.matmul %62, %63, %cst_44 {dimension_numbers = #tpu.dot_dimension_numbers<[1], [0], [0], [1], [0, 0, 1, 1], [], []>} : vector<8x16xf32>, vector<16x32xf32>, vector<8x32xf32> -> vector<8x32xf32>
      %c0_45 = arith.constant 0 : index
      %c0_46 = arith.constant 0 : index
      %65 = vector.load %arg3[%c0_45, %c0_46] : memref<8x32xf32, #tpu.memory_space<vmem>>, vector<8x32xf32>
      %66 = arith.addf %64, %65 : vector<8x32xf32>
      %c0_47 = arith.constant 0 : index
      %c0_48 = arith.constant 0 : index
      %67 = vector.load %arg16[%c0_47, %c0_48] : memref<8x32xf32, #tpu.memory_space<vmem>>, vector<8x32xf32>
      tpu.vector_store %arg16[%c0_47, %c0_48], %66 {strides = array<i32>} : memref<8x32xf32, #tpu.memory_space<vmem>>, vector<8x32xf32>,
    } else {
    }
    %c0 = arith.constant 0 : index
    %c0_1 = arith.constant 0 : index
    %3 = vector.load %arg16[%c0, %c0_1] : memref<8x32xf32, #tpu.memory_space<vmem>>, vector<8x32xf32>
    %c0_2 = arith.constant 0 : index
    %c0_3 = arith.constant 0 : index
    %c0_4 = arith.constant 0 : index
    %4 = vector.load %arg4[%c0_2, %c0_3, %c0_4] : memref<1x32x48xf32, #tpu.memory_space<vmem>>, vector<1x32x48xf32>
    %5 = vector.shape_cast %4 : vector<1x32x48xf32> to vector<32x48xf32>
    %cst = arith.constant dense<0.000000e+00> : vector<8x48xf32>
    %6 = tpu.matmul %3, %5, %cst {dimension_numbers = #tpu.dot_dimension_numbers<[1], [0], [0], [1], [0, 0, 1, 1], [], []>} : vector<8x32xf32>, vector<32x48xf32>, vector<8x48xf32> -> vector<8x48xf32>
    %c0_5 = arith.constant 0 : index
    %c0_6 = arith.constant 0 : index
    %c0_7 = arith.constant 0 : index
    %7 = vector.load %arg5[%c0_5, %c0_6, %c0_7] : memref<1x1x48xf32, #tpu.memory_space<vmem>>, vector<1x1x48xf32>
    %8 = vector.shape_cast %7 : vector<1x1x48xf32> to vector<1x48xf32>
    %9 = vector.broadcast %8 : vector<1x48xf32> to vector<8x48xf32>
    %10 = arith.addf %6, %9 : vector<8x48xf32>
    %11 = vector.extract_strided_slice %10 {offsets = [0, 0], sizes = [8, 16], strides = [1, 1]} : vector<8x48xf32> to vector<8x16xf32>
    %12 = vector.extract_strided_slice %10 {offsets = [0, 16], sizes = [8, 16], strides = [1, 1]} : vector<8x48xf32> to vector<8x16xf32>
    %13 = vector.extract_strided_slice %10 {offsets = [0, 32], sizes = [8, 16], strides = [1, 1]} : vector<8x48xf32> to vector<8x16xf32>
    %cst_8 = arith.constant dense<0.000000e+00> : vector<8x8xf32>
    %14 = tpu.matmul %11, %12, %cst_8 {dimension_numbers = #tpu.dot_dimension_numbers<[1], [1], [0], [0], [0, 0, 1, 0], [], []>} : vector<8x16xf32>, vector<8x16xf32>, vector<8x8xf32> -> vector<8x8xf32>
    %cst_9 = arith.constant dense<0xFF800000> : vector<8xf32>
    %15 = vector.multi_reduction <maximumf>, %14, %cst_9 [1] : vector<8x8xf32> to vector<8xf32>
    %16 = vector.shape_cast %15 : vector<8xf32> to vector<8x1xf32>
    %17 = vector.broadcast %16 : vector<8x1xf32> to vector<8x8xf32>
    %18 = arith.subf %14, %17 : vector<8x8xf32>
    %19 = math.exp %18 : vector<8x8xf32>
    %cst_10 = arith.constant dense<0.000000e+00> : vector<8xf32>
    %20 = vector.multi_reduction <add>, %19, %cst_10 [1] : vector<8x8xf32> to vector<8xf32>
    %21 = vector.shape_cast %20 : vector<8xf32> to vector<8x1xf32>
    %22 = tpu.reciprocal %21 {approx = true} : vector<8x1xf32> -> vector<8x1xf32>
    %23 = vector.broadcast %22 : vector<8x1xf32> to vector<8x8xf32>
    %24 = arith.mulf %19, %23 : vector<8x8xf32>
    %c0_11 = arith.constant 0 : index
    %c0_12 = arith.constant 0 : index
    %c0_13 = arith.constant 0 : index
    %25 = vector.load %arg14[%c0_11, %c0_12, %c0_13] : memref<1x8x8xf32, #tpu.memory_space<vmem>>, vector<1x8x8xf32>
    %26 = vector.shape_cast %25 : vector<1x8x8xf32> to vector<8x8xf32>
    %27 = vector.shape_cast %24 : vector<8x8xf32> to vector<1x8x8xf32>
    tpu.vector_store %arg14[%c0_11, %c0_12, %c0_13], %27 {strides = array<i32>} : memref<1x8x8xf32, #tpu.memory_space<vmem>>, vector<1x8x8xf32>,
    %cst_14 = arith.constant dense<0.000000e+00> : vector<8x16xf32>
    %28 = tpu.matmul %24, %13, %cst_14 {dimension_numbers = #tpu.dot_dimension_numbers<[1], [0], [0], [1], [0, 0, 1, 1], [], []>} : vector<8x8xf32>, vector<8x16xf32>, vector<8x16xf32> -> vector<8x16xf32>
    %c0_15 = arith.constant 0 : index
    %c0_16 = arith.constant 0 : index
    %c0_17 = arith.constant 0 : index
    %29 = vector.load %arg6[%c0_15, %c0_16, %c0_17] : memref<1x16x32xf32, #tpu.memory_space<vmem>>, vector<1x16x32xf32>
    %30 = vector.shape_cast %29 : vector<1x16x32xf32> to vector<16x32xf32>
    %cst_18 = arith.constant dense<0.000000e+00> : vector<8x32xf32>
    %31 = tpu.matmul %28, %30, %cst_18 {dimension_numbers = #tpu.dot_dimension_numbers<[1], [0], [0], [1], [0, 0, 1, 1], [], []>} : vector<8x16xf32>, vector<16x32xf32>, vector<8x32xf32> -> vector<8x32xf32>
    %c0_19 = arith.constant 0 : index
    %c0_20 = arith.constant 0 : index
    %c0_21 = arith.constant 0 : index
    %32 = vector.load %arg7[%c0_19, %c0_20, %c0_21] : memref<1x1x32xf32, #tpu.memory_space<vmem>>, vector<1x1x32xf32>
    %33 = vector.shape_cast %32 : vector<1x1x32xf32> to vector<1x32xf32>
    %34 = vector.broadcast %33 : vector<1x32xf32> to vector<8x32xf32>
    %35 = arith.addf %31, %34 : vector<8x32xf32>
    %36 = arith.addf %35, %3 : vector<8x32xf32>
    %c0_22 = arith.constant 0 : index
    %c0_23 = arith.constant 0 : index
    %c0_24 = arith.constant 0 : index
    %37 = vector.load %arg8[%c0_22, %c0_23, %c0_24] : memref<1x32x16xf32, #tpu.memory_space<vmem>>, vector<1x32x16xf32>
    %38 = vector.shape_cast %37 : vector<1x32x16xf32> to vector<32x16xf32>
    %cst_25 = arith.constant dense<0.000000e+00> : vector<8x16xf32>
    %39 = tpu.matmul %36, %38, %cst_25 {dimension_numbers = #tpu.dot_dimension_numbers<[1], [0], [0], [1], [0, 0, 1, 1], [], []>} : vector<8x32xf32>, vector<32x16xf32>, vector<8x16xf32> -> vector<8x16xf32>
    %c0_26 = arith.constant 0 : index
    %c0_27 = arith.constant 0 : index
    %c0_28 = arith.constant 0 : index
    %40 = vector.load %arg9[%c0_26, %c0_27, %c0_28] : memref<1x1x16xf32, #tpu.memory_space<vmem>>, vector<1x1x16xf32>
    %41 = vector.shape_cast %40 : vector<1x1x16xf32> to vector<1x16xf32>
    %42 = vector.broadcast %41 : vector<1x16xf32> to vector<8x16xf32>
    %43 = arith.addf %39, %42 : vector<8x16xf32>
    %cst_29 = arith.constant 0.000000e+00 : f32
    %44 = vector.broadcast %cst_29 : f32 to vector<8x16xf32>
    %45 = arith.maximumf %43, %44 : vector<8x16xf32>
    %c0_30 = arith.constant 0 : index
    %c0_31 = arith.constant 0 : index
    %c0_32 = arith.constant 0 : index
    %46 = vector.load %arg10[%c0_30, %c0_31, %c0_32] : memref<1x16x32xf32, #tpu.memory_space<vmem>>, vector<1x16x32xf32>
    %47 = vector.shape_cast %46 : vector<1x16x32xf32> to vector<16x32xf32>
    %cst_33 = arith.constant dense<0.000000e+00> : vector<8x32xf32>
    %48 = tpu.matmul %45, %47, %cst_33 {dimension_numbers = #tpu.dot_dimension_numbers<[1], [0], [0], [1], [0, 0, 1, 1], [], []>} : vector<8x16xf32>, vector<16x32xf32>, vector<8x32xf32> -> vector<8x32xf32>
    %c0_34 = arith.constant 0 : index
    %c0_35 = arith.constant 0 : index
    %c0_36 = arith.constant 0 : index
    %49 = vector.load %arg11[%c0_34, %c0_35, %c0_36] : memref<1x1x32xf32, #tpu.memory_space<vmem>>, vector<1x1x32xf32>
    %50 = vector.shape_cast %49 : vector<1x1x32xf32> to vector<1x32xf32>
    %51 = vector.broadcast %50 : vector<1x32xf32> to vector<8x32xf32>
    %52 = arith.addf %48, %51 : vector<8x32xf32>
    %c0_37 = arith.constant 0 : index
    %c0_38 = arith.constant 0 : index
    %53 = vector.load %arg16[%c0_37, %c0_38] : memref<8x32xf32, #tpu.memory_space<vmem>>, vector<8x32xf32>
    tpu.vector_store %arg16[%c0_37, %c0_38], %52 {strides = array<i32>} : memref<8x32xf32, #tpu.memory_space<vmem>>, vector<8x32xf32>,
    %c1_i32 = arith.constant 1 : i32
    %54 = arith.cmpi eq, %arg0, %c1_i32 : i32
    %55 = arith.extui %54 : i1 to i32
    %c0_i32_39 = arith.constant 0 : i32
    %56 = arith.cmpi ne, %55, %c0_i32_39 : i32
    scf.if %56 {
      %c0_40 = arith.constant 0 : index
      %c0_41 = arith.constant 0 : index
      %57 = vector.load %arg12[%c0_40, %c0_41] : memref<32x4xf32, #tpu.memory_space<vmem>>, vector<32x4xf32>
      %cst_42 = arith.constant dense<0.000000e+00> : vector<8x4xf32>
      %58 = tpu.matmul %52, %57, %cst_42 {dimension_numbers = #tpu.dot_dimension_numbers<[1], [0], [0], [1], [0, 0, 1, 1], [], []>} : vector<8x32xf32>, vector<32x4xf32>, vector<8x4xf32> -> vector<8x4xf32>
      %c0_43 = arith.constant 0 : index
      %c0_44 = arith.constant 0 : index
      %59 = vector.load %arg13[%c0_43, %c0_44] : memref<1x4xf32, #tpu.memory_space<vmem>>, vector<1x4xf32>
      %60 = vector.broadcast %59 : vector<1x4xf32> to vector<8x4xf32>
      %61 = arith.addf %58, %60 : vector<8x4xf32>
      %cst_45 = arith.constant dense<0xFF800000> : vector<8xf32>
      %62 = vector.multi_reduction <maximumf>, %61, %cst_45 [1] : vector<8x4xf32> to vector<8xf32>
      %63 = vector.shape_cast %62 : vector<8xf32> to vector<8x1xf32>
      %64 = vector.broadcast %63 : vector<8x1xf32> to vector<8x4xf32>
      %65 = arith.subf %61, %64 : vector<8x4xf32>
      %66 = math.exp %65 : vector<8x4xf32>
      %cst_46 = arith.constant dense<0.000000e+00> : vector<8xf32>
      %67 = vector.multi_reduction <add>, %66, %cst_46 [1] : vector<8x4xf32> to vector<8xf32>
      %68 = vector.shape_cast %67 : vector<8xf32> to vector<8x1xf32>
      %69 = math.log %68 : vector<8x1xf32>
      %70 = arith.addf %63, %69 : vector<8x1xf32>
      %71 = vector.broadcast %70 : vector<8x1xf32> to vector<8x4xf32>
      %72 = arith.subf %61, %71 : vector<8x4xf32>
      %c0_47 = arith.constant 0 : index
      %c0_48 = arith.constant 0 : index
      %73 = vector.load %arg15[%c0_47, %c0_48] : memref<8x4xf32, #tpu.memory_space<vmem>>, vector<8x4xf32>
      tpu.vector_store %arg15[%c0_47, %c0_48], %72 {strides = array<i32>} : memref<8x4xf32, #tpu.memory_space<vmem>>, vector<8x4xf32>,
    } else {
    }
    return
  }
  func.func @transform_0(%arg0: i32) -> (i32, i32) {
    %c0_i32 = arith.constant 0 : i32
    %c0_i32_0 = arith.constant 0 : i32
    %c0_i32_1 = arith.constant 0 : i32
    return %c0_i32, %c0_i32_0 : i32, i32
  }
  func.func @transform_1(%arg0: i32) -> (i32, i32) {
    %c0_i32 = arith.constant 0 : i32
    %c0_i32_0 = arith.constant 0 : i32
    %c0_i32_1 = arith.constant 0 : i32
    return %c0_i32, %c0_i32_0 : i32, i32
  }
  func.func @transform_2(%arg0: i32) -> (i32, i32) {
    %c0_i32 = arith.constant 0 : i32
    %c0_i32_0 = arith.constant 0 : i32
    %c0_i32_1 = arith.constant 0 : i32
    return %c0_i32, %c0_i32_0 : i32, i32
  }
  func.func @transform_3(%arg0: i32) -> (i32, i32, i32) {
    %c0_i32 = arith.constant 0 : i32
    %c0_i32_0 = arith.constant 0 : i32
    %c0_i32_1 = arith.constant 0 : i32
    return %arg0, %c0_i32, %c0_i32_0 : i32, i32, i32
  }
  func.func @transform_4(%arg0: i32) -> (i32, i32, i32) {
    %c0_i32 = arith.constant 0 : i32
    %c0_i32_0 = arith.constant 0 : i32
    %c0_i32_1 = arith.constant 0 : i32
    return %arg0, %c0_i32, %c0_i32_0 : i32, i32, i32
  }
  func.func @transform_5(%arg0: i32) -> (i32, i32, i32) {
    %c0_i32 = arith.constant 0 : i32
    %c0_i32_0 = arith.constant 0 : i32
    %c0_i32_1 = arith.constant 0 : i32
    return %arg0, %c0_i32, %c0_i32_0 : i32, i32, i32
  }
  func.func @transform_6(%arg0: i32) -> (i32, i32, i32) {
    %c0_i32 = arith.constant 0 : i32
    %c0_i32_0 = arith.constant 0 : i32
    %c0_i32_1 = arith.constant 0 : i32
    return %arg0, %c0_i32, %c0_i32_0 : i32, i32, i32
  }
  func.func @transform_7(%arg0: i32) -> (i32, i32, i32) {
    %c0_i32 = arith.constant 0 : i32
    %c0_i32_0 = arith.constant 0 : i32
    %c0_i32_1 = arith.constant 0 : i32
    return %arg0, %c0_i32, %c0_i32_0 : i32, i32, i32
  }
  func.func @transform_8(%arg0: i32) -> (i32, i32, i32) {
    %c0_i32 = arith.constant 0 : i32
    %c0_i32_0 = arith.constant 0 : i32
    %c0_i32_1 = arith.constant 0 : i32
    return %arg0, %c0_i32, %c0_i32_0 : i32, i32, i32
  }
  func.func @transform_9(%arg0: i32) -> (i32, i32, i32) {
    %c0_i32 = arith.constant 0 : i32
    %c0_i32_0 = arith.constant 0 : i32
    %c0_i32_1 = arith.constant 0 : i32
    return %arg0, %c0_i32, %c0_i32_0 : i32, i32, i32
  }
  func.func @transform_10(%arg0: i32) -> (i32, i32, i32) {
    %c0_i32 = arith.constant 0 : i32
    %c0_i32_0 = arith.constant 0 : i32
    %c0_i32_1 = arith.constant 0 : i32
    return %arg0, %c0_i32, %c0_i32_0 : i32, i32, i32
  }
  func.func @transform_11(%arg0: i32) -> (i32, i32) {
    %c0_i32 = arith.constant 0 : i32
    %c0_i32_0 = arith.constant 0 : i32
    %c0_i32_1 = arith.constant 0 : i32
    return %c0_i32, %c0_i32_0 : i32, i32
  }
  func.func @transform_12(%arg0: i32) -> (i32, i32) {
    %c0_i32 = arith.constant 0 : i32
    %c0_i32_0 = arith.constant 0 : i32
    %c0_i32_1 = arith.constant 0 : i32
    return %c0_i32, %c0_i32_0 : i32, i32
  }
  func.func @transform_13(%arg0: i32) -> (i32, i32, i32) {
    %c0_i32 = arith.constant 0 : i32
    %c0_i32_0 = arith.constant 0 : i32
    %c0_i32_1 = arith.constant 0 : i32
    return %arg0, %c0_i32, %c0_i32_0 : i32, i32, i32
  }
  func.func @transform_14(%arg0: i32) -> (i32, i32) {
    %c0_i32 = arith.constant 0 : i32
    %c0_i32_0 = arith.constant 0 : i32
    %c0_i32_1 = arith.constant 0 : i32
    return %c0_i32, %c0_i32_0 : i32, i32
  }
}

</mosaic_0001>

<bundles_post_ra>
// kernel: _fused_forward.1
= control target key start
LH: loop header
LB: loop body
LE: loop exit
PB: predicated region body
PF: predicated region fallthrough
CT: control target
= control target key end

     0   :  { %s2554_s0 = inlined_call_operand.vmem [shape: s32[8,1], index: 0, kind: input, shape index: {}]   ;;  %s2555_s1 = inlined_call_operand.hbm [shape: f32[16,32], index: 1, kind: input, shape index: {}]   ;;  %s2556_s2 = inlined_call_operand.vmem [shape: f32[8,32], index: 2, kind: input, shape index: {}]   ;;  %s2557_s3 = inlined_call_operand.vmem [shape: f32[2,32,48], index: 3, kind: input, shape index: {}]   ;;  %s2558_s4 = inlined_call_operand.vmem [shape: f32[2,1,48], index: 4, kind: input, shape index: {}]   ;;  %s2559_s5 = inlined_call_operand.vmem [shape: f32[2,16,32], index: 5, kind: input, shape index: {}]   ;;  %s2560_s6 = inlined_call_operand.hbm [shape: f32[2,1,32], index: 6, kind: input, shape index: {}]   ;;  %s2561_s7 = inlined_call_operand.vmem [shape: f32[2,32,16], index: 7, kind: input, shape index: {}]   ;;  %s2562_s8 = inlined_call_operand.hbm [shape: f32[2,1,16], index: 8, kind: input, shape index: {}]   ;;  %s2563_s9 = inlined_call_operand.vmem [shape: f32[2,16,32], index: 9, kind: input, shape index: {}]   ;;  %s2564_s10 = inlined_call_operand.hbm [shape: f32[2,1,32], index: 10, kind: input, shape index: {}]   ;;  %s2565_s11 = inlined_call_operand.vmem [shape: f32[32,4], index: 11, kind: input, shape index: {}]   ;;  %s2566_s12 = inlined_call_operand.hbm [shape: f32[1,4], index: 12, kind: input, shape index: {}]   ;;  %s2567_s13 = inlined_call_operand.hbm [shape: f32[2,8,8], index: 13, kind: output, shape index: {0}]   ;;  %s2568_s14 = inlined_call_operand.vmem [shape: f32[8,4], index: 14, kind: output, shape index: {1}]  }
   0x1   :  { %2590 = sst [smem:[#allocation24_spill]] %s2554_s0 }
   0x2   :  { %2591 = sst [smem:[#allocation25_spill]] %s2556_s2 }
   0x3   :  { %2592 = sst [smem:[#allocation26_spill]] %s2560_s6 }
   0x4   :  { %2593 = sst [smem:[#allocation27_spill]] %s2563_s9 }
   0x5   :  { %2594 = sst [smem:[#allocation28_spill]] %s2565_s11 }
   0x6   :  { %2595 = sst [smem:[#allocation29_spill]] %s2566_s12 }
   0x7   :  { %2596 = sst [smem:[#allocation30_spill]] %s2567_s13 }
   0x8   :  { %2597 = sst [smem:[#allocation31_spill]] %s2568_s14 }
   0x9   :  { %20 = vsyncpa [#allocation4], 0 }
   0xa   :  { %21 = vsyncpa [#allocation7], 0 }
   0xb   :  { %23 = vsyncpa [#allocation7 + $0x1], 0 }
   0xc   :  { %24 = vsyncpa [#allocation10], 0 }
   0xd   :  { %26 = vsyncpa [#allocation10 + $0x1], 0 }
   0xe   :  { %27 = vsyncpa [#allocation5], 0 }
   0xf   :  { %29 = vsyncpa [#allocation5 + $0x1], 0  ;;  %s2150_s29 = smov 0   ;;  %s2152_s30 = smov 0  }
  0x10   :  { %s2154_s15 = smov 0   ;;  %s2156_s16 = smov 0  }
  0x11 LB: > { %2598 = sst [smem:[#allocation18_spill]] %s2041_s29  ;;  %s2171_s17 = sadd.s32 4294967295, %s2053_s16   ;;  %s2053_s16 = sphi %s2156_s16, %s2646_s16   ;;  %s2049_s15 = sphi %s2154_s15, %s2648_s15   ;;  %s2045_s30 = sphi %s2152_s30, %s2650_s30   ;;  %s2041_s29 = sphi %s2150_s29, %s2649_s29  }
  0x12   : > { %2599 = sst [smem:[#allocation19_spill]] %s2049_s15  ;;  %s1565_s18 = sadd.s32 4294967294, %s2053_s16  }
  0x13   : > { %p196_p0 = scmp.ne.s32.totalorder %s2045_s30, %s2041_s29  ;;  %p2574_p1 = scmp.eq.s32.totalorder %s2171_s17, 0 }
  0x14   : > { %p372_p3 = scmp.eq.s32.totalorder %s1565_s18, 1  ;;  %p1566_p5 = scmp.ge.s32.totalorder %s2053_s16, 1 }
  0x15   : > { %p2180_p4 = por %p2574_p1, %p196_p0  ;;  %p400_p7 = scmp.lt.s32.totalorder %s2053_s16, 3 }
  0x16   : > { %p2185_p6 = por %p372_p3, %p196_p0  ;;  %s2055_s22 = smov [#allocation11]  }
  0x17   : > { %s2600_s19 = scalar_select %p2180_p4, 1, 0 }
  0x18   : > { %s2601_s20 = scalar_select %p2185_p6, 1, 0 }
  0x19   : > { %p2191_p9 = pnand %p1566_p5, %p400_p7  ;;  %s435_s23 = sshll.u32 %s2055_s22, 4  ;;  %s436_s23 = int_to_ptr.vmem [resolvable:$true] %s435_s23 }
  0x1a   : > { %2602 = sst [smem:[#allocation20_spill]] %s2601_s20  ;;  %s2199_s24 = sadd.s32 1, %s2053_s16  }
  0x1b   : > { %s2603_s21 = scalar_select %p2191_p9, 1, 0 }
  0x1c   : > { %p1745_p11 = pneg %p2191_p9  ;;  %2604 = sst [smem:[#allocation21_spill]] %s2199_s24 }
  0x1d   : > { %s180_s26 = ssub.s32 %s2053_s16, %s2199_s24  ;;  %s183_s28 = sadd.s32 1, %s2049_s15 }
  0x1e   : > { %p2203_p12 = pnand %p1745_p11, %p2574_p1  ;;  %p2209_p13 = scmp.eq.s32.totalorder %s180_s26, 0 }
  0x1f   : > { %s2607_s12 = sld [smem:[#allocation29_spill]] }
  0x20   : > { %s2605_s25 = scalar_select %p2203_p12, 1, 0 }
  0x21   : > { %s2606_s27 = scalar_select %p2209_p13, 1, 0 }
  0x22   : > { %p2582_p5 = pneg %p2203_p12 }
  0x25   : > { %s1829_s20 = scalar_lea.hbm %s2607_s12, 16 }
  0x26   : > { %p1830_p3 = scmp.ne.s32.totalorder %s2607_s12, %s1829_s20  ;;  %p1836_p10 = scmp.lt.u32.totalorder %s1829_s20, %s2607_s12 }
  0x28   : > { %p1832_p7 = pnand %p2582_p5, %p1830_p3 }
  0x2a   : > { %p1833_p11 = pneg %p1832_p7 }
  0x2c   : > { %p1838_p8 = pnand %p1836_p10, %p1833_p11 }
  0x2e   : > { %1841 = shalt.err (!%p1838_p8)
}
  0x2f   : > { %s1842_s14 = scalar_lea.vmem %s436_s23, 16  ;;  %s1849_s13 = scalar_lea.vmem %s436_s23, 32 }
  0x30   : > { %p1843_p1 = scmp.ne.s32.totalorder %s436_s23, %s1842_s14  ;;  %p1850_p6 = scmp.lt.s32.totalorder %s436_s23, %s436_s23 }
  0x31   : > { %p1851_p4 = scmp.lt.s32.totalorder %s1849_s13, %s1842_s14 }
  0x32   : > { %p1845_p2 = pnand %p1843_p1, %p2582_p5 }
  0x33   : > { %p1852_p9 = por %p1851_p4, %p1850_p6 }
  0x34   : > { %p1846_p0 = pneg %p1845_p2 }
  0x36   : > { %p1853_p13 = pnand %p1852_p9, %p1846_p0 }
  0x38   : > { %1856 = shalt.err (!%p1853_p13)
}
  0x39   : > { %1751 = dma.hbm_to_vmem [thread:$0]  (!%p2203_p12), %s2607_s12, 16, %s436_s23, [#allocation10]  }
  0x3a   : > { %p2608_p1 = scmp.ne.s32.totalorder %s2606_s27, 0  ;;  %p191_p2 = scmp.eq.s32.totalorder %s2053_s16, 0 }
  0x3b   : > { %p2610_p4 = scmp.ne.s32.totalorder %s2049_s15, %s2045_s30  ;;  %p2611_p6 = scmp.eq.s32.totalorder %s2171_s17, 1 }
  0x3c   : > { %s2241_s14 = scalar_select %p2608_p1, %s2049_s15, %s183_s28  }
  0x3d   : > { %p2249_p8 = por %p2611_p6, %p2610_p4  ;;  %p1768_p9 = scmp.lt.s32.totalorder %s2053_s16, 2 }
  0x3e   : > { %2609 = sst [smem:[#allocation22_spill]] %s2241_s14  ;;  %s2581_s18 = sand.u32 1, %s2053_s16  }
  0x3f   : > { %s2612_s20 = scalar_select %p2249_p8, 1, 0 }
  0x40   : > { %p2614_p10 = pmov %p2610_p4  ;;  %s2259_s22 = sand.u32 1, %s2049_s15  }
  0x41   : > { %2613 = sst [smem:[#allocation23_spill]] %s2612_s20  ;;  %s2262_s26 = sshll.u32 %s2053_s16, 4 }
  0x42   : > { %p192_p13 = por %p191_p2, %p2614_p10  ;;  %s2615_s6 = sld [smem:[#allocation26_spill]] }
  0x43   : > { %s471_s13 = scalar_lea.vmem [#allocation6], %s2259_s22  ;;  %s2279_s12 = scalar_lea.sflag [#allocation7], %s2581_s18 }
  0x44   : > { %s478_s29 = sshll.u32 %s471_s13, 4  ;;  %p2271_p0 = pnand %p1768_p9, %p192_p13  ;;  %s2275_s29 = int_to_ptr.vmem [resolvable:$true] %s478_s29 }
  0x46   : > { %s2616_s24 = scalar_select %p2271_p0, 1, 0 }
  0x47   : > { %p2285_p7 = pneg %p2271_p0 }
  0x48   : > { %s2268_s28 = scalar_lea.hbm %s2615_s6, %s2262_s26  ;;  %s1862_s15 = scalar_lea.hbm %s2615_s6, 32 }
  0x49   : > { %s1857_s14 = scalar_lea.hbm %s2268_s28, 16  ;;  %p1863_p2 = scmp.lt.u32.totalorder %s2268_s28, %s2615_s6 }
  0x4a   : > { %p1858_p3 = scmp.ne.s32.totalorder %s2268_s28, %s1857_s14  ;;  %p1864_p4 = scmp.lt.u32.totalorder %s1862_s15, %s1857_s14 }
  0x4b   : > { %s2617_s23 = scalar_select %p2285_p7, 1, 0 }
  0x4c   : > { %p1860_p11 = pnand %p2285_p7, %p1858_p3  ;;  %p1865_p6 = por %p1864_p4, %p1863_p2 }
  0x4d   : > { %p1866_p9 = scmp.lt.u32.totalorder %s1857_s14, %s2268_s28 }
  0x4e   : > { %p1861_p1 = pneg %p1860_p11 }
  0x4f   : > { %p1867_p10 = por %p1866_p9, %p1865_p6 }
  0x51   : > { %p1868_p13 = pnand %p1867_p10, %p1861_p1 }
  0x53   : > { %1871 = shalt.err (!%p1868_p13)
}
  0x54   : > { %s1872_s18 = scalar_lea.vmem %s2275_s29, 16  ;;  %s2056_s27 = smov [#allocation6]  }
  0x55   : > { %p1873_p3 = scmp.ne.s32.totalorder %s2275_s29, %s1872_s18  ;;  %s1877_s13 = sshll.u32 %s2056_s27, 4  ;;  %s1878_s13 = int_to_ptr.vmem [resolvable:$false] %s1877_s13 }
  0x56   : > { %s1879_s11 = scalar_lea.vmem %s1878_s13, 32  ;;  %p1880_p8 = scmp.lt.s32.totalorder %s2275_s29, %s1878_s13 }
  0x57   : > { %p1875_p11 = pnand %p1873_p3, %p2285_p7  ;;  %p1881_p12 = scmp.lt.s32.totalorder %s1879_s11, %s1872_s18 }
  0x59   : > { %p1876_p5 = pneg %p1875_p11  ;;  %p1882_p2 = por %p1881_p12, %p1880_p8 }
  0x5b   : > { %p1883_p4 = pnand %p1882_p2, %p1876_p5 }
  0x5d   : > { %1886 = shalt.err (!%p1883_p4)
}
  0x5e   : > { %1755 = dma.hbm_to_vmem [thread:$0]  (!%p2271_p0), %s2268_s28, 16, %s2275_s29, %s2279_s12  }
  0x5f   : > { %s2057_s15 = smov [#allocation3]   ;;  %s1887_s27 = scalar_lea.hbm %s2555_s1, 256 }
  0x60   : > { %s415_s14 = sshll.u32 %s2057_s15, 4  ;;  %p1888_p12 = scmp.ne.s32.totalorder %s2555_s1, %s1887_s27  ;;  %s416_s14 = int_to_ptr.vmem [resolvable:$true] %s415_s14 }
  0x61   : > { %p2618_p5 = scmp.ne.s32.totalorder %s2605_s25, 0  ;;  %p1894_p9 = scmp.lt.u32.totalorder %s1887_s27, %s2555_s1 }
  0x63   : > { %p2619_p8 = pneg %p2618_p5 }
  0x65   : > { %p1890_p1 = pnand %p1888_p12, %p2619_p8 }
  0x67   : > { %p1891_p6 = pneg %p1890_p1 }
  0x69   : > { %p1896_p10 = pnand %p1894_p9, %p1891_p6 }
  0x6b   : > { %1899 = shalt.err (!%p1896_p10)
}
  0x6c   : > { %s1900_s28 = scalar_lea.vmem %s416_s14, 256  ;;  %p2620_p3 = pmov %p2619_p8 }
  0x6d   : > { %p1901_p13 = scmp.ne.s32.totalorder %s416_s14, %s1900_s28  ;;  %p1908_p4 = scmp.lt.s32.totalorder %s416_s14, %s416_s14 }
  0x6e   : > { %p1909_p0 = scmp.lt.s32.totalorder %s1900_s28, %s1900_s28 }
  0x6f   : > { %p1903_p11 = pnand %p1901_p13, %p2620_p3 }
  0x70   : > { %p1910_p7 = por %p1909_p0, %p1908_p4 }
  0x71   : > { %p1904_p2 = pneg %p1903_p11 }
  0x73   : > { %p1911_p8 = pnand %p1910_p7, %p1904_p2 }
  0x75   : > { %1914 = shalt.err (!%p1911_p8)
}
  0x76   : > { %s2058_s2 = smov 128   ;;  %s2059_s6 = smov 8  }
  0x77   : > { %1748 = dma.hbm_to_vmem [thread:$0]  (!%p2618_p5), %s2555_s1, 256, %s416_s14, [#allocation4], %s2058_s2, %s2058_s2, %s2059_s6  }
  0x78   : > { %s2333_s13 = scalar_lea.hbm %s2562_s8, %s2262_s26  ;;  %s496_s18 = scalar_lea.vmem [#allocation8], %s2259_s22 }
  0x79   : > { %s503_s11 = sshll.u32 %s496_s18, 4  ;;  %s2340_s25 = scalar_lea.hbm %s2564_s10, %s2262_s26  ;;  %s504_s11 = int_to_ptr.vmem [resolvable:$true] %s503_s11 }
  0x7a   : > { %s1915_s9 = scalar_lea.hbm %s2333_s13, 16  ;;  %p2621_p7 = scmp.ne.s32.totalorder %s2617_s23, 0 }
  0x7b   : > { %p1916_p0 = scmp.ne.s32.totalorder %s2333_s13, %s1915_s9  ;;  %s1920_s6 = scalar_lea.hbm %s2562_s8, 32 }
  0x7c   : > { %p1921_p1 = scmp.lt.u32.totalorder %s2333_s13, %s2562_s8  ;;  %p1922_p6 = scmp.lt.u32.totalorder %s1920_s6, %s1915_s9 }
  0x7d   : > { %p1918_p12 = pnand %p1916_p0, %p2621_p7  ;;  %p1924_p10 = scmp.lt.u32.totalorder %s1915_s9, %s2333_s13 }
  0x7e   : > { %p1923_p9 = por %p1922_p6, %p1921_p1 }
  0x7f   : > { %p1919_p5 = pneg %p1918_p12 }
  0x80   : > { %p1925_p13 = por %p1924_p10, %p1923_p9 }
  0x82   : > { %p1926_p3 = pnand %p1925_p13, %p1919_p5 }
  0x84   : > { %1929 = shalt.err (!%p1926_p3)
}
  0x85   : > { %s1930_s0 = scalar_lea.vmem %s504_s11, 16  ;;  %s2060_s26 = smov [#allocation8]  }
  0x86   : > { %p1931_p11 = scmp.ne.s32.totalorder %s504_s11, %s1930_s0  ;;  %s1935_s20 = sshll.u32 %s2060_s26, 4  ;;  %s1936_s20 = int_to_ptr.vmem [resolvable:$false] %s1935_s20 }
  0x87   : > { %s1937_s27 = scalar_lea.vmem %s1936_s20, 32  ;;  %p1938_p8 = scmp.lt.s32.totalorder %s504_s11, %s1936_s20 }
  0x88   : > { %p1933_p2 = pnand %p1931_p11, %p2621_p7  ;;  %p1939_p0 = scmp.lt.s32.totalorder %s1937_s27, %s1930_s0 }
  0x8a   : > { %p1934_p4 = pneg %p1933_p2  ;;  %p1940_p12 = por %p1939_p0, %p1938_p8 }
  0x8c   : > { %p1941_p1 = pnand %p1940_p12, %p1934_p4 }
  0x8e   : > { %1944 = shalt.err (!%p1941_p1)
}
  0x8f   : > { %p2622_p6 = scmp.ne.s32.totalorder %s2616_s24, 0  ;;  %s521_s9 = scalar_lea.vmem [#allocation9], %s2259_s22 }
  0x90   : > { %s528_s18 = sshll.u32 %s521_s9, 4  ;;  %s2623_s28 = sand.u32 1, %s2053_s16   ;;  %s529_s18 = int_to_ptr.vmem [resolvable:$true] %s528_s18 }
  0x91   : > { %1758 = dma.hbm_to_vmem [thread:$0]  (!%p2622_p6), %s2333_s13, 16, %s504_s11, %s2279_s12  }
  0x92   : > { %s519_s14 = scalar_lea.sflag [#allocation10], %s2623_s28  ;;  %s1945_s2 = scalar_lea.hbm %s2340_s25, 16 }
  0x93   : > { %p1946_p5 = scmp.ne.s32.totalorder %s2340_s25, %s1945_s2  ;;  %s1950_s15 = scalar_lea.hbm %s2564_s10, 32 }
  0x94   : > { %p1951_p13 = scmp.lt.u32.totalorder %s2340_s25, %s2564_s10  ;;  %p1952_p3 = scmp.lt.u32.totalorder %s1950_s15, %s1945_s2 }
  0x95   : > { %p1948_p9 = pnand %p1946_p5, %p2621_p7  ;;  %p1954_p2 = scmp.lt.u32.totalorder %s1945_s2, %s2340_s25 }
  0x96   : > { %p1953_p11 = por %p1952_p3, %p1951_p13 }
  0x97   : > { %p1949_p10 = pneg %p1948_p9 }
  0x98   : > { %p1955_p4 = por %p1954_p2, %p1953_p11 }
  0x9a   : > { %p1956_p8 = pnand %p1955_p4, %p1949_p10 }
  0x9c   : > { %1959 = shalt.err (!%p1956_p8)
}
  0x9d   : > { %s1960_s12 = scalar_lea.vmem %s529_s18, 16  ;;  %s2061_s22 = smov [#allocation9]  }
  0x9e   : > { %p1961_p0 = scmp.ne.s32.totalorder %s529_s18, %s1960_s12  ;;  %s1965_s13 = sshll.u32 %s2061_s22, 4  ;;  %s1966_s13 = int_to_ptr.vmem [resolvable:$false] %s1965_s13 }
  0x9f   : > { %s1967_s11 = scalar_lea.vmem %s1966_s13, 32  ;;  %p1968_p5 = scmp.lt.s32.totalorder %s529_s18, %s1966_s13 }
  0xa0   : > { %p1963_p12 = pnand %p1961_p0, %p2621_p7  ;;  %p1969_p9 = scmp.lt.s32.totalorder %s1967_s11, %s1960_s12 }
  0xa2   : > { %p1964_p1 = pneg %p1963_p12  ;;  %p1970_p6 = por %p1969_p9, %p1968_p5 }
  0xa4   : > { %p1971_p3 = pnand %p1970_p6, %p1964_p1 }
  0xa6   : > { %1974 = shalt.err (!%p1971_p3)
}
  0xa7   : > { %p2624_p13 = scmp.ne.s32.totalorder %s2616_s24, 0  ;;  %p2625_p10 = scmp.ne.s32.totalorder %s2603_s21, 0 }
  0xa8   : > { %p2626_p11 = scmp.eq.s32.totalorder (!%p2625_p10), %s2171_s17, 0 }
  0xa9   : > { %1761 = dma.hbm_to_vmem [thread:$0]  (!%p2624_p13), %s2340_s25, 16, %s529_s18, %s519_s14  }
  0xaa   : > { %537 = sbr.rel (%p2625_p10) target bundleno = 2834 (0xb12), region = 72 }
  0xb1   : > { %2020 = dma.done.wait (%p2626_p11), [#allocation4], 256   ;;  %p2627_p7 = pmov %p2626_p11 }
  0xb2   : > { %s543_s23 = sand.u32 1, %s2171_s17   ;;  %s2388_s20 = sand.u32 1, %s2045_s30  }
  0xb3   : > { %2022 = vsyncadd (%p2627_p7), [#allocation4], 4294967040  ;;  %s544_s27 = scalar_lea.sflag [#allocation7], %s543_s23  ;;  %s546_s24 = scalar_lea.vmem [#allocation6], %s2388_s20 }
  0xb4   : > { %p2628_p6 = scmp.ne.s32.totalorder %s2600_s19, 0 }
  0xb6   : > { %2024 = dma.done.wait (%p2628_p6), %s544_s27, 32  }
  0xb7   : > { %2026 = vsyncadd (%p2628_p6), %s544_s27, 4294967264  ;;  %s560_s25 = scalar_lea.sflag [#allocation10], %s543_s23 }
  0xb8   : > { %2028 = dma.done.wait (%p2628_p6), %s560_s25, 16  }
  0xb9   : > { %2030 = vsyncadd (%p2628_p6), %s560_s25, 4294967280  ;;  %p2629_p2 = pmov %p2627_p7 }
  0xbb   : > { %2032 = dma.done.wait (%p2629_p2), [#allocation10], 16   ;;  %p2630_p4 = pmov %p2629_p2 }
  0xbc   : > { %s1576_s18 = sshll.u32 %s2388_s20, 3  ;;  %p641_p8 = scmp.lt.s32.totalorder %s2171_s17, 1 }
  0xbd   : > { %2034 = vsyncadd (%p2630_p4), [#allocation10], 4294967280  ;;  %s2631_s2 = sld [smem:[#allocation27_spill]]  ;;  %s2436_s21 = scalar_lea.vmem [#allocation12], %s1576_s18 }
  0xbe   : > { %s2408_s28 = scalar_select %p641_p8, %s2171_s17, 1 }
  0xbf   : > { %p2632_p0 = scmp.ne.s32.totalorder %s2171_s17, 0 }
  0xc0   : > { %s1606_s14 = sshll.u32 %s2408_s28, 5  ;;  %s648_s6 = scalar_lea.vmem %s2558_s4, %s2408_s28  ;;  %v677_v1 = vld [vmem:[#allocation3] sm:$0xff] (!%p2632_p0)  ;;  %v678_v2 = vld [vmem:[#allocation3 + $0x8] sm:$0xff] (!%p2632_p0)  ;;  %v2062_v3 = vmov (!%p2632_p0), 0   ;;  %v2063_v4 = vmov (!%p2632_p0), 0.0|0.0   ;;  %vm2064_vm0 = vmmov (!%p2632_p0), 0   ;;  %v669_v7 = vlaneseq (!%p2632_p0) }
  0xc1   : > { %s2418_s0 = scalar_lea.vmem %s2557_s3, %s1606_s14  ;;  %s1607_s26 = sshll.u32 %s2408_s28, 4  ;;  %1820 = vset.pattern.permute.xlu0 (!%p2632_p0), %v2062_v3  ;;  %1702 = vmatprep.subr.bf16.mxu0 (!%p2632_p0), %v2063_v4  ;;  %v1703_v5 = vpack.c.bf16 (!%p2632_p0), %v678_v2, %v677_v1  ;;  %v2065_v6 = vmov (!%p2632_p0), 0.0   ;;  %vm680_vm1 = vcmask (!%p2632_p0), 130048   ;;  %vm754_vm3 = vcmask (!%p2632_p0), 261120  }
  0xc2   : > { %s2424_s13 = scalar_lea.vmem %s2559_s5, %s1607_s26  ;;  %s2429_s27 = scalar_lea.vmem %s2561_s7, %s1606_s14  ;;  %1642 = vmatprep.mubr.msk.f32.mxu0 (!%p2632_p0), %vm2064_vm0, %v2065_v6  ;;  %v670_v8 = vand.u32 (!%p2632_p0), 127, %v669_v7 }
  0xc3   : > { %s2434_s19 = scalar_lea.vmem %s2631_s2, %s1607_s26  ;;  %667 = sbr.rel (%p2632_p0) target bundleno = 548 (0x224), region = 96  ;;  %1704 = vmatpush3.bf16.msra.mxu0 (!%p2632_p0), %v1703_v5 }
  0xc4   : > { %s2633_s12 = sld [smem:[#allocation24_spill]] (!%p2632_p0)  ;;  %s2634_s14 = sld [smem:[#allocation25_spill]] (!%p2632_p0) }
  0xca   : > { %v668_v0 = vld [vmem:[%s2633_s12] sm:$0xff] }
  0xcb   : > { %672 = vperm.xlu0 %1820, %v668_v0   ;;  %v679_v11 = vld [vmem:[%s2634_s14] sm:$0xff] }
 0x14a   : > { %v673_v9 = vpop.permute.xlu0 %672 }
 0x14b   : > { %vm674_vm2 = vcmp.eq.s32.totalorder %v670_v8, %v673_v9 }
 0x14c   : > { %v1586_v10 = vsel %vm674_vm2, 1.0, %v2065_v6 }
 0x14d   : > { %1643 = vmatmul.mubr.msk.f32.vlgmr.msra.gmra.mrb[0].mxu0 %vm680_vm1, %v1586_v10 }
 0x220   : > { %v750_v12 = vpop.f32.mrb[0].mxu0 }
 0x221   : > { %v751_v13 = vadd.f32 %v750_v12, %v679_v11  ;;  %v1644_v14 = vpop.f32.mrb[1].mxu0 }
 0x223   : > { %755 = vst.msk [vmem:[#allocation2] sm:$0xff] %vm754_vm3, %v751_v13 }
 0x224 PF: > { %v757_v15 = vld [vmem:[%s2418_s0] sm:$0xff]  ;;  %v758_v16 = vld [vmem:[%s2418_s0 + $0x8] sm:$0xff]  ;;  %v759_v17 = vld [vmem:[%s2418_s0 + $0x10] sm:$0xff]  ;;  %v2066_v18 = vmov 0.0|0.0   ;;  %vm2067_vm4 = vmmov 0   ;;  %v2068_v21 = vmov 0.0  }
 0x225   : > { %1705 = vmatprep.subr.bf16.mxu0 %v2066_v18  ;;  %v1706_v19 = vpack.c.bf16 %v758_v16, %v757_v15  ;;  %v760_v20 = vld [vmem:[%s2418_s0 + $0x18] sm:$0xff]  ;;  %1653 = vmatprep.mubr.msk.f32.mxu0 %vm2067_vm4, %v2068_v21  ;;  %vm768_vm5 = vcmask 261120   ;;  %v1588_v24 = vld [vmem:[%s648_s6] ss:$0 sm:$0xff]  ;;  %s2069_s22 = smov 112   ;;  %vm845_vm6 = vcmask 130048  }
 0x226   : > { %1656 = vmatprep.subr.mxu1 %v2068_v21  ;;  %1658 = vmatprep.mubr.msk.f32.mxu1 %vm2067_vm4, %v2068_v21  ;;  %v1709_v22 = vpack.c.bf16 %v760_v20, %v759_v17  ;;  %vm920_vm7 = vcmask 64512   ;;  %s2070_s28 = smov 96   ;;  %v1009_v37 = vld [vmem:[%s2424_s13] sm:$0xff]  ;;  %v1010_v38 = vld [vmem:[%s2424_s13 + $0x8] sm:$0xff]  ;;  %v1094_v49 = vld [vmem:[%s2429_s27 + $0x10] sm:$0xff]  ;;  %s2635_s6 = scalar_lea.vmem [#allocation8], %s2388_s20 }
 0x227   : > { %1707 = vmatpush3.bf16.msra.mxu0 %v1706_v19  ;;  %v1712_v39 = vpack.c.bf16 %v1010_v38, %v1009_v37  ;;  %v1092_v44 = vld [vmem:[%s2429_s27] sm:$0xff]  ;;  %v1093_v45 = vld [vmem:[%s2429_s27 + $0x8] sm:$0xff]  ;;  %v1095_v50 = vld [vmem:[%s2429_s27 + $0x18] sm:$0xff]  ;;  %p1599_p12 = scmp.ne.s32.totalorder %s2171_s17, 1 }
 0x228   : > { %1708 = vmatprep.subr.bf16.mxu0 %v2066_v18  ;;  %v1715_v46 = vpack.c.bf16 %v1093_v45, %v1092_v44  ;;  %v1718_v51 = vpack.c.bf16 %v1095_v50, %v1094_v49  ;;  %v1593_v52 = vld [vmem:[%s546_s24] ss:$0 sm:$0xff]  ;;  %v1178_v58 = vld [vmem:[%s2434_s19 + $0x8] sm:$0xff]  ;;  %s2636_s24 = scalar_lea.vmem [#allocation9], %s2388_s20  ;;  %s2637_s23 = sld [smem:[#allocation28_spill]] (!%p1599_p12)  ;;  %v2071_v8 = vmov (!%p1599_p12), 0.0|0.0  }
 0x229   : > { %v1177_v57 = vld [vmem:[%s2434_s19] sm:$0xff]  ;;  %vm2072_vm8 = vmmov (!%p1599_p12), 0   ;;  %v2073_v11 = vmov (!%p1599_p12), 0.0   ;;  %v1600_v13 = vld [vmem:[#allocation11] ss:$0 sm:$0xff] (!%p1599_p12)  ;;  %vm1348_vm9 = vcmask (!%p1599_p12), 31744  }
 0x22a   : > { %v2452_v23 = vld [vmem:[#allocation2] sm:$0xff]  ;;  %v1721_v59 = vpack.c.bf16 %v1178_v58, %v1177_v57  ;;  %s2638_s18 = sld [smem:[#allocation31_spill]] (!%p1599_p12) }
 0x22b   : > { %1710 = vmatpush3.bf16.msra.mxu0 %v1709_v22  ;;  %v1595_v60 = vld [vmem:[%s2635_s6] ss:$0 sm:$0xff] }
 0x22c   : > { %1711 = vmatprep.subr.bf16.mxu0 %v2066_v18  ;;  %v1597_v1 = vld [vmem:[%s2636_s24] ss:$0 sm:$0xff] }
 0x22e   : > { %1654 = vmatmul.mubr.msk.f32.vlgmr.msra.gmra.mrb[0].mxu0 %vm768_vm5, %v2452_v23  ;;  %v1264_v5 = vld [vmem:[%s2637_s23] sm:$0xff] (!%p1599_p12)  ;;  %v1265_v6 = vld [vmem:[%s2637_s23 + $0x8] sm:$0xff] (!%p1599_p12)  ;;  %v1266_v7 = vld [vmem:[%s2637_s23 + $0x10] sm:$0xff] (!%p1599_p12) }
 0x22f   : > { %1670 = vmatprep.mubr.msk.f32.mxu0 %vm2067_vm4, %v2068_v21  ;;  %1713 = vmatpush3.bf16.msra.mxu0 %v1712_v39  ;;  %v1724_v9 = vpack.c.bf16 (!%p1599_p12), %v1265_v6, %v1264_v5  ;;  %v1267_v10 = vld [vmem:[%s2637_s23 + $0x18] sm:$0xff] (!%p1599_p12) }
 0x230   : > { %1720 = vmatprep.subr.bf16.mxu0 %v2066_v18  ;;  %v1727_v12 = vpack.c.bf16 (!%p1599_p12), %v1267_v10, %v1266_v7 }
 0x301   : > { %v838_v25 = vpop.f32.mrb[0].mxu0 }
 0x302   : > { %v839_v26 = vadd.f32 %v1588_v24, %v838_v25  ;;  %v1655_v27 = vpop.f32.mrb[1].mxu0 }
 0x304   : > { %843 = vrot.lane.b32.xlu0 %v839_v26, %s2069_s22 }
 0x376   : > { %v844_v28 = vpop.permute.xlu0 %843 }
 0x377   : > { %1657 = vmatpush3.xpose.msk.msra.mxu1 %vm845_vm6, %v844_v28 }
 0x378   : > { %1661 = vmatprep.subr.mxu1 %v2068_v21 }
 0x37a   : > { %1659 = vmatmul.mubr.msk.f32.vlgmr.msra.gmra.mrb[0].mxu1 %vm845_vm6, %v839_v26 }
 0x37b   : > { %1663 = vmatprep.mubr.msk.f32.mxu1 %vm2067_vm4, %v2068_v21 }
 0x44d   : > { %v916_v29 = vpop.f32.mrb[0].mxu1 }
 0x44e   : > { %v1660_v30 = vpop.f32.mrb[1].mxu1  ;;  %v921_v31 = vsel %vm920_vm7, %v916_v29, -inf }
 0x44f   : > { %922 = vmax.xlane.f32.xlu0 %v921_v31 }
 0x4dc   : > { %v923_v32 = vpop.xlane.xlu0 %922 }
 0x4dd   : > { %v924_v33 = vsub.f32 %v916_v29, %v923_v32 }
 0x4df   : > { %v925_v34 = vmul.f32 1.442695, %v924_v33 }
 0x4e1   : > { %1821 = vpow2.f32 %v925_v34 }
 0x4eb   : > { %v1822_v35 = vpop.eup %1821 }
 0x4ec   : > { %v927_v36 = vsel %vm920_vm7, %v1822_v35, 0.0 }
 0x4ed   : > { %928 = vadd.xlane.f32.xlu1 %v927_v36 }
 0x4fe   : > { %933 = vrot.lane.b32.xlu1 %v839_v26, %s2070_s28 }
 0x57a   : > { %v929_v40 = vpop.xlane.xlu1 %928 }
 0x57b   : > { %1823 = vrcp.f32 %v929_v40 }
 0x57e   : > { %v934_v41 = vpop.permute.xlu1 %933 }
 0x57f   : > { %1662 = vmatpush3.msra.mxu1 %v934_v41 }
 0x580   : > { %1714 = vmatprep.subr.bf16.mxu1 %v2066_v18 }
 0x585   : > { %v1824_v42 = vpop.eup %1823 }
 0x586   : > { %v931_v43 = vmul.f32 %v1824_v42, %v1822_v35 }
 0x588   : > { %932 = vst.msk [vmem:[%s2436_s21] sm:$0xff] %vm920_vm7, %v931_v43  ;;  %1664 = vmatmul.mubr.msk.f32.vlgmr.msra.gmra.mrb[2].mxu1 %vm920_vm7, %v931_v43 }
 0x589   : > { %1681 = vmatprep.mubr.msk.f32.mxu1 %vm2067_vm4, %v2068_v21  ;;  %1716 = vmatpush3.bf16.msra.mxu1 %v1715_v46 }
 0x58a   : > { %1717 = vmatprep.subr.bf16.mxu1 %v2066_v18 }
 0x58d   : > { %1719 = vmatpush3.bf16.msra.mxu1 %v1718_v51 }
 0x65b   : > { %v1005_v47 = vpop.f32.mrb[2].mxu1 }
 0x65c   : > { %v1665_v48 = vpop.f32.mrb[3].mxu1  ;;  %1671 = vmatmul.mubr.msk.f32.vlgmr.msra.gmra.mrb[2].mxu0 %vm845_vm6, %v1005_v47 }
 0x65d   : > { %1688 = vmatprep.mubr.msk.f32.mxu0 %vm2067_vm4, %v2068_v21  ;;  %1722 = vmatpush3.bf16.msra.mxu0 %v1721_v59 }
 0x65e   : > { %1723 = vmatprep.subr.bf16.mxu0 (!%p1599_p12), %v2071_v8 }
 0x72f   : > { %v1087_v53 = vpop.f32.mrb[2].mxu0 }
 0x730   : > { %v1088_v54 = vadd.f32 %v1593_v52, %v1087_v53  ;;  %v1672_v55 = vpop.f32.mrb[3].mxu0 }
 0x732   : > { %v1091_v56 = vadd.f32 %v1088_v54, %v2452_v23 }
 0x734   : > { %1682 = vmatmul.mubr.msk.f32.vlgmr.msra.gmra.mrb[4].mxu1 %vm768_vm5, %v1091_v56 }
 0x807   : > { %v1172_v61 = vpop.f32.mrb[4].mxu1 }
 0x808   : > { %v1173_v62 = vadd.f32 %v1595_v60, %v1172_v61  ;;  %v1683_v63 = vpop.f32.mrb[5].mxu1 }
 0x80a   : > { %v1176_v0 = vmax.f32 %v1173_v62, 0.0 }
 0x80c   : > { %1689 = vmatmul.mubr.msk.f32.vlgmr.msra.gmra.mrb[4].mxu0 %vm845_vm6, %v1176_v0 }
 0x80d   : > { %1699 = vmatprep.mubr.msk.f32.mxu0 (!%p1599_p12), %vm2072_vm8, %v2073_v11  ;;  %1725 = vmatpush3.bf16.msra.mxu0 (!%p1599_p12), %v1724_v9 }
 0x80e   : > { %1726 = vmatprep.subr.bf16.mxu0 (!%p1599_p12), %v2071_v8 }
 0x811   : > { %1728 = vmatpush3.bf16.msra.mxu0 (!%p1599_p12), %v1727_v12 }
 0x8dc   : > { %1263 = sbr.rel (%p1599_p12) target bundleno = 2807 (0xaf7), region = 100 }
 0x8df   : > { %v1255_v2 = vpop.f32.mrb[4].mxu0 }
 0x8e0   : > { %v1256_v3 = vadd.f32 %v1597_v1, %v1255_v2  ;;  %v1690_v4 = vpop.f32.mrb[5].mxu0 }
 0x8e2   : > { %1259 = vst.msk [vmem:[#allocation2] sm:$0xff] %vm768_vm5, %v1256_v3  ;;  %1700 = vmatmul.mubr.msk.f32.vlgmr.msra.gmra.mrb[0].mxu0 (!%p1599_p12), %vm768_vm5, %v1256_v3 }
 0x9b5   : > { %v1344_v14 = vpop.f32.mrb[0].mxu0 }
 0x9b6   : > { %v1345_v15 = vadd.f32 %v1600_v13, %v1344_v14  ;;  %v1701_v16 = vpop.f32.mrb[1].mxu0 }
 0x9b8   : > { %v1349_v17 = vsel %vm1348_vm9, %v1345_v15, -inf }
 0x9b9   : > { %1350 = vmax.xlane.f32.xlu0 %v1349_v17 }
 0xa46   : > { %v1351_v18 = vpop.xlane.xlu0 %1350 }
 0xa47   : > { %v1352_v19 = vsub.f32 %v1345_v15, %v1351_v18 }
 0xa49   : > { %v1353_v20 = vmul.f32 1.442695, %v1352_v19 }
 0xa4b   : > { %1825 = vpow2.f32 %v1353_v20 }
 0xa55   : > { %v1826_v21 = vpop.eup %1825 }
 0xa56   : > { %v1355_v22 = vsel %vm1348_vm9, %v1826_v21, 0.0 }
 0xa57   : > { %1356 = vadd.xlane.f32.xlu0 %v1355_v22 }
 0xae4   : > { %v1357_v23 = vpop.xlane.xlu0 %1356 }
 0xae5   : > { %1827 = vlog2.f32 %v1357_v23 }
 0xaef   : > { %v1828_v24 = vpop.eup %1827 }
 0xaf0   : > { %v1359_v25 = vmul.f32 0.6931472, %v1828_v24 }
 0xaf2   : > { %v1360_v26 = vadd.f32 %v1359_v25, %v1351_v18 }
 0xaf4   : > { %v1361_v27 = vsub.f32 %v1345_v15, %v1360_v26 }
 0xaf6   : > { %1362 = vst.msk [vmem:[%s2638_s18] sm:$0xff] %vm1348_vm9, %v1361_v27 }
 0xaf7 PF: > { %s2639_s14 = sld [smem:[#allocation23_spill]]  ;;  %s1603_s0 = sshll.u32 %s2171_s17, 7 }
 0xaf8   : > { %s2640_s28 = sld [smem:[#allocation30_spill]]  ;;  %s1377_s24 = sshll.u32 %s2436_s21, 4  ;;  %s1378_s24 = int_to_ptr.vmem [resolvable:$true] %s1377_s24 }
 0xaf9   : > { %s1364_s13 = scalar_lea.sflag [#allocation5], %s2388_s20  ;;  %s1975_s11 = scalar_lea.vmem %s1378_s24, 128 }
 0xafa   : > { %p1976_p1 = scmp.ne.s32.totalorder %s1378_s24, %s1975_s11  ;;  %s2074_s27 = smov [#allocation12]  }
 0xafb   : > { %s1979_s25 = sshll.u32 %s2074_s27, 4  ;;  %s1980_s25 = int_to_ptr.vmem [resolvable:$false] %s1979_s25 }
 0xafc   : > { %s1981_s2 = scalar_lea.vmem %s1980_s25, 256  ;;  %p1982_p13 = scmp.lt.s32.totalorder %s1378_s24, %s1980_s25 }
 0xafd   : > { %p2641_p5 = scmp.ne.s32.totalorder %s2639_s14, 0  ;;  %p1983_p10 = scmp.lt.s32.totalorder %s1981_s2, %s1975_s11 }
 0xafe   : > { %s2515_s6 = scalar_lea.hbm %s2640_s28, %s1603_s0 }
 0xaff   : > { %p1977_p9 = pnand %p1976_p1, %p2641_p5  ;;  %p1984_p11 = por %p1983_p10, %p1982_p13 }
 0xb01   : > { %p1978_p3 = pneg %p1977_p9 }
 0xb03   : > { %p1985_p7 = pnand %p1984_p11, %p1978_p3 }
 0xb05   : > { %1988 = shalt.err (!%p1985_p7)
}
 0xb06   : > { %s1989_s17 = scalar_lea.hbm %s2515_s6, 128  ;;  %s1993_s19 = scalar_lea.hbm %s2640_s28, 256 }
 0xb07   : > { %p1990_p6 = scmp.ne.s32.totalorder %s2515_s6, %s1989_s17  ;;  %p1994_p8 = scmp.lt.u32.totalorder %s2515_s6, %s2640_s28 }
 0xb08   : > { %p1995_p0 = scmp.lt.u32.totalorder %s1993_s19, %s1989_s17  ;;  %p1997_p1 = scmp.lt.u32.totalorder %s1989_s17, %s2515_s6 }
 0xb09   : > { %p1991_p2 = pnand %p1990_p6, %p2641_p5 }
 0xb0a   : > { %p1996_p12 = por %p1995_p0, %p1994_p8 }
 0xb0b   : > { %p1992_p4 = pneg %p1991_p2 }
 0xb0c   : > { %p1998_p9 = por %p1997_p1, %p1996_p12 }
 0xb0e   : > { %p1999_p3 = pnand %p1998_p9, %p1992_p4 }
 0xb10   : > { %2002 = shalt.err (!%p1999_p3)
}
 0xb11   : > { %1743 = dma.vmem_to_hbm [thread:$0]  (%p2641_p5), %s1378_s24, 128, %s2515_s6, %s1364_s13  }
 0xb12 PF: > { %s2642_s12 = sld [smem:[#allocation18_spill]]  ;;  %s2643_s9 = sld [smem:[#allocation20_spill]] }
 0xb13   : > { %p2645_p10 = scmp.ge.s32.totalorder %s2053_s16, 2 }
 0xb18   : > { %s1395_s18 = sand.u32 1, %s2642_s12   ;;  %p2644_p13 = scmp.ne.s32.totalorder %s2643_s9, 0 }
 0xb19   : > { %s1396_s0 = scalar_lea.sflag [#allocation5], %s1395_s18 }
 0xb1a   : > { %p1763_p11 = pnand %p2645_p10, %p2644_p13 }
 0xb1c   : > { %2036 = dma.done.wait (!%p1763_p11), %s1396_s0, 128  }
 0xb1d   : > { %2038 = vsyncadd (!%p1763_p11), %s1396_s0, 4294967168  ;;  %s2646_s16 = sld [smem:[#allocation21_spill]]  ;;  %s2647_s26 = sld [smem:[#allocation19_spill]] }
 0xb1e   : > { %s2648_s15 = sld [smem:[#allocation22_spill]]  ;;  %s2649_s29 = smov %s2045_s30 }
 0xb23   : > { %p32_p7 = scmp.ge.s32.totalorder %s2646_s16, 4   ;;  %s2650_s30 = smov %s2647_s26 }
 0xb25   :  { %34 = sbr.rel (!%p32_p7) target bundleno = 17 (0x11), region = 181 }
 0xb2c   :  { %1401 = vsyncpa [#allocation4], 1 }
 0xb2d   :  { %1403 = vsyncpa [#allocation4 + $0x1], 1 }
 0xb2e   :  { %1404 = vsyncpa [#allocation7], 1 }
 0xb2f   :  { %1406 = vsyncpa [#allocation7 + $0x1], 1 }
 0xb30   :  { %1407 = vsyncpa [#allocation10], 1 }
 0xb31   :  { %1409 = vsyncpa [#allocation10 + $0x1], 1 }
 0xb32   :  { %1410 = vsyncpa [#allocation5], 1 }
 0xb33   :  { %1412 = vsyncpa [#allocation5 + $0x1], 1 }

</bundles_post_ra>
